<compile_context>
chip_gen: v7x
topology: tpu7x:2x2x1
jax: 0.10.0
libtpu: 0.0.40
codegen_flags: <defaults>
</compile_context>

<pallas_src>
import jax
import jax.numpy as jnp
from jax.experimental import pallas as pl
from jax.experimental.pallas import tpu as pltpu


def lora_kernel(x_ref, a_ref, b_ref, o_ref):
    """One M-tile of y = x + (x @ A) @ B.  A/B are fully VMEM-resident."""
    x = x_ref[...]
    # Low-rank path on the MXU, accumulate in f32.
    xa = jnp.dot(x, a_ref[...], preferred_element_type=jnp.float32)
    xab = jnp.dot(xa, b_ref[...], preferred_element_type=jnp.float32)
    # Residual add in f32 (correct on v5e too, which has no bf16 VALU),
    # one downcast at the store.
    o_ref[...] = (x.astype(jnp.float32) + xab).astype(o_ref.dtype)


def _choose_tile_m(M, D, itemsize):
    """Largest M-tile (multiple of 8, divides M, <= 1024 rows) whose
    double-buffered x + out tiles fit a ~40 MiB budget (safe for v7x 64 MiB,
    leaves headroom for the f32 temporaries the matmuls materialize)."""
    budget = 40 * 1024 * 1024
    cap = budget // max(1, 4 * D * itemsize)   # 2 x-tiles + 2 out-tiles
    cap = min(cap, 1024, M)                    # >=512 rows is ~HBM roofline
    cap = (cap // 8) * 8
    if cap < 8 or M % 8 != 0:
        return M                               # tiny/ragged problem: one block
    t = cap
    while t >= 8:
        if M % t == 0:
            return t
        t -= 8
    return M                                   # fall back to one full block


def lora_forward(x, lora_A, lora_B):
    M, D = x.shape
    Da, R = lora_A.shape
    Rb, Db = lora_B.shape
    assert Da == D and Rb == R and Db == D

    itemsize = jnp.dtype(x.dtype).itemsize
    ab_itemsize = jnp.dtype(lora_A.dtype).itemsize
    tile_m = _choose_tile_m(M, D, itemsize)
    grid_m = M // tile_m

    # Double-buffered x/out tiles + (double-buffered) A, B + f32 temporaries,
    # plus headroom; capped below v7x's 64 MiB physical VMEM.
    vmem_bytes = (4 * tile_m * D * itemsize          # 2x x-tile + 2x out-tile
                  + 4 * D * R * ab_itemsize          # A, B (double-buffered)
                  + 2 * tile_m * D * 4               # f32 temporaries
                  + (16 << 20))                      # headroom
    vmem_bytes = int(min(vmem_bytes, 60 << 20))

    cost = pl.CostEstimate(
        flops=4 * M * D * R + M * D,
        transcendentals=0,
        bytes_accessed=2 * M * D * itemsize + 2 * D * R * ab_itemsize,
    )

    return pl.pallas_call(
        lora_kernel,
        out_shape=jax.ShapeDtypeStruct((M, D), x.dtype),
        grid_spec=pltpu.PrefetchScalarGridSpec(
            num_scalar_prefetch=0,
            grid=(grid_m,),
            in_specs=[
                pl.BlockSpec((tile_m, D), lambda i: (i, 0)),   # x: streamed
                pl.BlockSpec((D, R), lambda i: (0, 0)),        # A: resident
                pl.BlockSpec((R, D), lambda i: (0, 0)),        # B: resident
            ],
            out_specs=pl.BlockSpec((tile_m, D), lambda i: (i, 0)),
        ),
        compiler_params=pltpu.CompilerParams(
            dimension_semantics=("parallel",),   # v7x: shard M over both TCs
            vmem_limit_bytes=vmem_bytes,
        ),
        cost_estimate=cost,
    )(x, lora_A, lora_B)


if __name__ == "__main__":
    # Small but hardware-friendly demo shapes: D % 128 == 0 (lane-dense
    # stores), R >= 8 (f32 sublane), M a multiple of 8.
    batch = 16
    original_dim = 128
    rank = 8

    key = jax.random.PRNGKey(0)
    kx, ka, kb = jax.random.split(key, 3)

    x = jax.random.normal(kx, (batch, original_dim), dtype=jnp.float32)
    lora_A = jax.random.normal(ka, (original_dim, rank), dtype=jnp.float32)
    lora_B = jax.random.normal(kb, (rank, original_dim), dtype=jnp.float32)

    # Pure-JAX reference.
    ref = x + x @ lora_A @ lora_B

    out = lora_forward(x, lora_A, lora_B)
    jax.block_until_ready(out)

    assert out.shape == (batch, original_dim)
    assert jnp.allclose(out, ref, atol=1e-5, rtol=1e-5)

    print("KERNEL_OK")
</pallas_src>

<mosaic_0001>
module attributes {stable_mosaic.version = 11 : i64} {
  func.func @lora_kernel(%arg0: i32, %arg1: memref<16x128xf32, #tpu.memory_space<vmem>>, %arg2: memref<128x8xf32, #tpu.memory_space<vmem>>, %arg3: memref<8x128xf32, #tpu.memory_space<vmem>>, %arg4: memref<16x128xf32, #tpu.memory_space<vmem>>) attributes {dimension_semantics = [#tpu.dimension_semantics<parallel>], iteration_bounds = array<i64: 1>, scalar_prefetch = 0 : i64, scratch_operands = 0 : i64, tpu.core_type = #tpu.core_type<tc>, window_params = [{transform_indices = @transform_0, window_bounds = array<i64: 16, 128>}, {pipeline_mode = #tpu.pipeline_mode<synchronous>, transform_indices = @transform_1, window_bounds = array<i64: 128, 8>}, {pipeline_mode = #tpu.pipeline_mode<synchronous>, transform_indices = @transform_2, window_bounds = array<i64: 8, 128>}, {transform_indices = @transform_3, window_bounds = array<i64: 16, 128>}]} {
    %c0 = arith.constant 0 : index
    %c0_0 = arith.constant 0 : index
    %0 = vector.load %arg1[%c0, %c0_0] : memref<16x128xf32, #tpu.memory_space<vmem>>, vector<16x128xf32>
    %c0_1 = arith.constant 0 : index
    %c0_2 = arith.constant 0 : index
    %1 = vector.load %arg2[%c0_1, %c0_2] : memref<128x8xf32, #tpu.memory_space<vmem>>, vector<128x8xf32>
    %cst = arith.constant dense<0.000000e+00> : vector<16x8xf32>
    %2 = tpu.matmul %0, %1, %cst {dimension_numbers = #tpu.dot_dimension_numbers<[1], [0], [0], [1], [0, 0, 1, 1], [], []>} : vector<16x128xf32>, vector<128x8xf32>, vector<16x8xf32> -> vector<16x8xf32>
    %c0_3 = arith.constant 0 : index
    %c0_4 = arith.constant 0 : index
    %3 = vector.load %arg3[%c0_3, %c0_4] : memref<8x128xf32, #tpu.memory_space<vmem>>, vector<8x128xf32>
    %cst_5 = arith.constant dense<0.000000e+00> : vector<16x128xf32>
    %4 = tpu.matmul %2, %3, %cst_5 {dimension_numbers = #tpu.dot_dimension_numbers<[1], [0], [0], [1], [0, 0, 1, 1], [], []>} : vector<16x8xf32>, vector<8x128xf32>, vector<16x128xf32> -> vector<16x128xf32>
    %5 = arith.addf %0, %4 : vector<16x128xf32>
    %c0_6 = arith.constant 0 : index
    %c0_7 = arith.constant 0 : index
    %6 = vector.load %arg4[%c0_6, %c0_7] : memref<16x128xf32, #tpu.memory_space<vmem>>, vector<16x128xf32>
    tpu.vector_store %arg4[%c0_6, %c0_7], %5 {strides = array<i32>} : memref<16x128xf32, #tpu.memory_space<vmem>>, vector<16x128xf32>,
    return
  }
  func.func @transform_0(%arg0: i32) -> (i32, i32) {
    %c0_i32 = arith.constant 0 : i32
    %c0_i32_0 = arith.constant 0 : i32
    return %arg0, %c0_i32 : i32, i32
  }
  func.func @transform_1(%arg0: i32) -> (i32, i32) {
    %c0_i32 = arith.constant 0 : i32
    %c0_i32_0 = arith.constant 0 : i32
    %c0_i32_1 = arith.constant 0 : i32
    return %c0_i32, %c0_i32_0 : i32, i32
  }
  func.func @transform_2(%arg0: i32) -> (i32, i32) {
    %c0_i32 = arith.constant 0 : i32
    %c0_i32_0 = arith.constant 0 : i32
    %c0_i32_1 = arith.constant 0 : i32
    return %c0_i32, %c0_i32_0 : i32, i32
  }
  func.func @transform_3(%arg0: i32) -> (i32, i32) {
    %c0_i32 = arith.constant 0 : i32
    %c0_i32_0 = arith.constant 0 : i32
    return %arg0, %c0_i32 : i32, i32
  }
}

</mosaic_0001>

<bundles_post_ra>
// kernel: tpu_custom_call.1
= control target key start
LH: loop header
LB: loop body
LE: loop exit
PB: predicated region body
PF: predicated region fallthrough
CT: control target
= control target key end

     0   :  { %s425_s0 = inlined_call_operand.vmem [shape: f32[16,128], index: 0, kind: input, shape index: {}]   ;;  %s426_s1 = inlined_call_operand.vmem [shape: f32[128,8], index: 1, kind: input, shape index: {}]   ;;  %s427_s2 = inlined_call_operand.vmem [shape: f32[8,128], index: 2, kind: input, shape index: {}]   ;;  %s428_s3 = inlined_call_operand.hbm [shape: f32[16,128], index: 3, kind: output, shape index: {}]  }
   0x1   :  { %v17_v0 = vld [vmem:[%s426_s1] sm:$0xff]  ;;  %v18_v1 = vld [vmem:[%s426_s1 + $0x8] sm:$0xff]  ;;  %v19_v2 = vld [vmem:[%s426_s1 + $0x10] sm:$0xff] }
   0x2   :  { %v274_v3 = vpack.c.bf16 %v18_v1, %v17_v0  ;;  %v20_v4 = vld [vmem:[%s426_s1 + $0x18] sm:$0xff]  ;;  %v21_v6 = vld [vmem:[%s426_s1 + $0x20] sm:$0xff]  ;;  %v22_v7 = vld [vmem:[%s426_s1 + $0x28] sm:$0xff] }
   0x3   :  { %v278_v5 = vpack.c.bf16 %v20_v4, %v19_v2  ;;  %v282_v8 = vpack.c.bf16 %v22_v7, %v21_v6  ;;  %v15_v9 = vld [vmem:[%s425_s0] sm:$0xff]  ;;  %v23_v10 = vld [vmem:[%s426_s1 + $0x30] sm:$0xff]  ;;  %v24_v11 = vld [vmem:[%s426_s1 + $0x38] sm:$0xff] }
   0x4   :  { %275 = vmatprep.subr.bf16.mxu0 %v274_v3  ;;  %266 = vmatprep.mubr.f32.mxu0 %v15_v9 }
   0x5   :  { %277 = vmatpush3.bf16.msra.mxu0 %v274_v3 }
   0x6   :  { %279 = vmatprep.subr.bf16.mxu0 %v278_v5 }
   0x7   :  { %8 = vsyncpa [#allocation3], 0  ;;  %v286_v12 = vpack.c.bf16 %v24_v11, %v23_v10  ;;  %v25_v13 = vld [vmem:[%s426_s1 + $0x40] sm:$0xff]  ;;  %v26_v14 = vld [vmem:[%s426_s1 + $0x48] sm:$0xff]  ;;  %vm109_vm0 = vcmask 64512  }
   0x8   :  { %v290_v15 = vpack.c.bf16 %v26_v14, %v25_v13  ;;  %v27_v16 = vld [vmem:[%s426_s1 + $0x50] sm:$0xff]  ;;  %v28_v17 = vld [vmem:[%s426_s1 + $0x58] sm:$0xff]  ;;  %v29_v19 = vld [vmem:[%s426_s1 + $0x60] sm:$0xff] }
   0x9   :  { %281 = vmatpush3.bf16.msra.mxu0 %v278_v5  ;;  %v294_v18 = vpack.c.bf16 %v28_v17, %v27_v16  ;;  %v30_v20 = vld [vmem:[%s426_s1 + $0x68] sm:$0xff]  ;;  %v31_v22 = vld [vmem:[%s426_s1 + $0x70] sm:$0xff]  ;;  %v32_v23 = vld [vmem:[%s426_s1 + $0x78] sm:$0xff]  ;;  %s333_s1 = smov [#allocation2]  }
   0xa   :  { %283 = vmatprep.subr.bf16.mxu0 %v282_v8  ;;  %v298_v21 = vpack.c.bf16 %v30_v20, %v29_v19  ;;  %v302_v24 = vpack.c.bf16 %v32_v23, %v31_v22  ;;  %v16_v25 = vld [vmem:[%s425_s0 + $0x8] sm:$0xff]  ;;  %v108_v26 = vld [vmem:[%s427_s2] sm:$0xff]  ;;  %s200_s23 = sshll.u32 %s333_s1, 4  ;;  %s201_s23 = int_to_ptr.vmem [resolvable:$true] %s200_s23 }
   0xb   :  { %269 = vmatprep.subr.mxu1 %v108_v26  ;;  %s309_s0 = scalar_lea.vmem %s201_s23, 256  ;;  %p314_p1 = scmp.lt.s32.totalorder %s201_s23, %s201_s23 }
   0xc   :  { %270 = vmatpush3.msra.mxu1 %v108_v26  ;;  %p310_p0 = scmp.ne.s32.totalorder %s201_s23, %s309_s0  ;;  %p315_p2 = scmp.lt.s32.totalorder %s309_s0, %s309_s0 }
   0xd   :  { %285 = vmatpush3.bf16.msra.mxu0 %v282_v8 }
   0xe   :  { %287 = vmatprep.subr.bf16.mxu0 %v286_v12  ;;  %p316_p3 = por %p315_p2, %p314_p1 }
  0x10   :  { %p317_p4 = pnand %p316_p3, %p310_p0 }
  0x11   :  { %289 = vmatpush3.bf16.msra.mxu0 %v286_v12 }
  0x12   :  { %291 = vmatprep.subr.bf16.mxu0 %v290_v15 }
  0x15   :  { %293 = vmatpush3.bf16.msra.mxu0 %v290_v15 }
  0x16   :  { %295 = vmatprep.subr.bf16.mxu0 %v294_v18 }
  0x19   :  { %297 = vmatpush3.bf16.msra.mxu0 %v294_v18 }
  0x1a   :  { %299 = vmatprep.subr.bf16.mxu0 %v298_v21 }
  0x1d   :  { %301 = vmatpush3.bf16.msra.mxu0 %v298_v21 }
  0x1e   :  { %303 = vmatprep.subr.bf16.mxu0 %v302_v24 }
  0x21   :  { %305 = vmatpush3.bf16.msra.mxu0 %v302_v24 }
  0x24   :  { %267 = vmatmul.mubr.f32.vlgmr.msra.gmra.mrb[0].mxu0 %v16_v25 }
  0xf7   :  { %v268_v27 = vpop.f32.mrb[0].mxu0 }
  0xf8   :  { %v99_v28 = vpop.f32.mrb[1].mxu0 }
  0xf9   :  { %271 = vmatprep.mubr.msk.f32.mxu1 %vm109_vm0, %v99_v28 }
  0xfa   :  { %272 = vmatmul.mubr.msk.f32.vlgmr.msra.gmra.mrb[0].mxu1 %vm109_vm0, %v268_v27 }
 0x1cd   :  { %v273_v29 = vpop.f32.mrb[0].mxu1 }
 0x1ce   :  { %v192_v30 = vadd.f32 %v273_v29, %v16_v25  ;;  %v182_v31 = vpop.f32.mrb[1].mxu1 }
 0x1cf   :  { %v191_v32 = vadd.f32 %v182_v31, %v15_v9 }
 0x1d0   :  { %194 = vst [vmem:[#allocation2 + $0x8] sm:$0xff] %v192_v30 }
 0x1d1   :  { %193 = vst [vmem:[#allocation2] sm:$0xff] %v191_v32 }
 0x1d2   :  { %320 = shalt.err (!%p317_p4)
}
 0x1d3   :  { %s321_s25 = scalar_lea.hbm %s428_s3, 256 }
 0x1d4   :  { %p322_p5 = scmp.ne.s32.totalorder %s428_s3, %s321_s25  ;;  %p325_p6 = scmp.lt.u32.totalorder %s321_s25, %s428_s3 }
 0x1d6   :  { %p327_p7 = pnand %p325_p6, %p322_p5 }
 0x1d8   :  { %330 = shalt.err (!%p327_p7)
}
 0x1d9   :  { %s334_s30 = smov 128   ;;  %s335_s4 = smov 8  }
 0x1da   :  { %206 = dma.vmem_to_hbm [thread:$0]  %s201_s23, 256, %s428_s3, [#allocation3], %s334_s30, %s334_s30, %s335_s4  }
 0x1db   :  { %331 = dma.done.wait [#allocation3], 256  }
 0x1dc   :  { %332 = vsyncadd [#allocation3], 4294967040 }
 0x1dd   :  { %210 = vsyncpa [#allocation3], 1 }

</bundles_post_ra>
